<compile_context>
chip_gen: v5e
topology: v5e:2x2
jax: 0.10.0
libtpu: 0.0.40
codegen_flags: <defaults>
</compile_context>

<pallas_src>
import jax
import jax.numpy as jnp
from jax.experimental import pallas as pl
from jax.experimental.pallas import tpu as pltpu


# ----------------------------------------------------------------------------
# Kernel
# ----------------------------------------------------------------------------
def mish_kernel(x_ref, o_ref):
    """Elementwise Mish on one VMEM tile: y = x * tanh(softplus(x)).

    Uses the overflow-free identity
        tanh(log(1 + e^x)) = 1 - 2*a / ((1 + t)^2 + a),
        t = exp(-|x|),  a = t^2 for x >= 0 else 1,
    so only 2 EUP ops (exp, reciprocal) are needed per element.
    """
    x = x_ref[...].astype(jnp.float32)
    t = jnp.exp(-jnp.abs(x))                      # EUP; t in (0, 1], never overflows
    a = jnp.where(x >= 0.0, t * t, 1.0)           # VPU select
    denom = (1.0 + t) * (1.0 + t) + a             # VPU
    tanh_sp = 1.0 - 2.0 * a * pl.reciprocal(denom, approx=False)  # EUP recip
    o_ref[...] = (x * tanh_sp).astype(o_ref.dtype)


# ----------------------------------------------------------------------------
# Wrapper: lane-dense 2-D layout, big tiles, parallel grid
# ----------------------------------------------------------------------------
def _largest_lane_divisor(n):
    for lane in (1024, 512, 256, 128):
        if n % lane == 0:
            return lane
    return 128  # fallback: minimal (<128 element) pad will be needed


def mish(x, *, tile_bytes=2 * 1024 * 1024):
    """Mish over an arbitrarily shaped array via one fused Pallas call."""
    orig_shape = x.shape
    dtype = x.dtype
    n = x.size
    if n == 0:
        return x
    itemsize = jnp.dtype(dtype).itemsize

    # Lane-dense minor dim: largest multiple of 128 dividing n (pad is then a no-op).
    lane_w = _largest_lane_divisor(n)
    n_pad = pl.cdiv(n, lane_w) * lane_w
    padded = n_pad != n

    flat = jnp.ravel(x)
    if padded:  # only for n not divisible by 128 (rare); <128 extra elements
        flat = jnp.pad(flat, (0, n_pad - n))
    rows = n_pad // lane_w
    x2 = flat.reshape(rows, lane_w)

    cost = pl.CostEstimate(
        flops=8 * n,
        transcendentals=2 * n,
        bytes_accessed=2 * n * itemsize,
    )

    if rows <= 64:
        # Tiny inputs: one block, no grid, zero per-step overhead.
        out2 = pl.pallas_call(
            mish_kernel,
            out_shape=jax.ShapeDtypeStruct((rows, lane_w), dtype),
            cost_estimate=cost,
        )(x2)
    else:
        # Sublane packing granularity: 8 (f32), 16 (bf16/f16), 32 (int8/fp8).
        sub = 8 * max(1, 4 // itemsize)
        # Target ~2 MiB tiles, but guarantee a few grid steps on medium inputs
        # so DMA/compute overlap and megacore sharding actually kick in.
        target_rows = max(sub, (tile_bytes // (lane_w * itemsize)) // sub * sub)
        balanced_rows = max(sub, ((pl.cdiv(rows, 4) + sub - 1) // sub) * sub)
        row_tile = min(target_rows, balanced_rows)

        out2 = pl.pallas_call(
            mish_kernel,
            out_shape=jax.ShapeDtypeStruct((rows, lane_w), dtype),
            grid=(pl.cdiv(rows, row_tile),),   # ragged last block handled by Pallas
            in_specs=[pl.BlockSpec((row_tile, lane_w), lambda i: (i, 0))],
            out_specs=pl.BlockSpec((row_tile, lane_w), lambda i: (i, 0)),
            compiler_params=pltpu.CompilerParams(
                dimension_semantics=("parallel",)),
            cost_estimate=cost,
        )(x2)

    out_flat = out2.reshape(-1)
    if padded:
        out_flat = out_flat[:n]
    return out_flat.reshape(orig_shape)


# ----------------------------------------------------------------------------
# Reference (pure JAX) for correctness checking
# ----------------------------------------------------------------------------
def mish_ref(x):
    xf = x.astype(jnp.float32)
    return (xf * jnp.tanh(jax.nn.softplus(xf))).astype(x.dtype)


if __name__ == "__main__":
    fwd = jax.jit(mish)

    # Small input consistent with the module (batch=2, channels=4, 16x16).
    x = jax.random.normal(jax.random.PRNGKey(0), (2, 4, 16, 16), jnp.float32)
    y = fwd(x)
    jax.block_until_ready(y)
    assert y.shape == x.shape and y.dtype == x.dtype
    assert jnp.allclose(y, mish_ref(x), atol=1e-5, rtol=1e-5)

    # Larger input: exercises the grid path with a ragged last row-block,
    # no padding needed (n is a multiple of 1024).
    x_big = jax.random.normal(jax.random.PRNGKey(1), (64, 64, 17, 31), jnp.float32)
    y_big = fwd(x_big)
    jax.block_until_ready(y_big)
    assert jnp.allclose(y_big, mish_ref(x_big), atol=1e-5, rtol=1e-5)

    # Odd size: exercises the minimal-pad fallback path.
    x_odd = 10.0 * jax.random.normal(jax.random.PRNGKey(2), (3, 5, 7), jnp.float32)
    y_odd = fwd(x_odd)
    jax.block_until_ready(y_odd)
    assert jnp.allclose(y_odd, mish_ref(x_odd), atol=1e-5, rtol=1e-5)

    # bf16 input: I/O stays bf16 (halved HBM traffic), compute in f32 in-kernel.
    x_bf = jax.random.normal(jax.random.PRNGKey(3), (4, 8, 32, 32), jnp.bfloat16)
    y_bf = fwd(x_bf)
    jax.block_until_ready(y_bf)
    assert y_bf.dtype == jnp.bfloat16
    assert jnp.allclose(y_bf.astype(jnp.float32),
                        mish_ref(x_bf).astype(jnp.float32), atol=2e-2, rtol=2e-2)

    print("KERNEL_OK")
</pallas_src>

<mosaic_0001>
module attributes {stable_mosaic.version = 11 : i64} {
  func.func @mish_kernel(%arg0: memref<2x1024xf32, #tpu.memory_space<vmem>>, %arg1: memref<2x1024xf32, #tpu.memory_space<vmem>>) attributes {dimension_semantics = [], scalar_prefetch = 0 : i64, scratch_operands = 0 : i64, tpu.core_type = #tpu.core_type<tc>} {
    %c0 = arith.constant 0 : index
    %c0_0 = arith.constant 0 : index
    %0 = vector.load %arg0[%c0, %c0_0] : memref<2x1024xf32, #tpu.memory_space<vmem>>, vector<2x1024xf32>
    %1 = math.absf %0 : vector<2x1024xf32>
    %cst = arith.constant 0.000000e+00 : f32
    %2 = vector.broadcast %cst : f32 to vector<2x1024xf32>
    %3 = arith.subf %2, %1 : vector<2x1024xf32>
    %4 = math.exp %3 : vector<2x1024xf32>
    %cst_1 = arith.constant 0.000000e+00 : f32
    %5 = vector.broadcast %cst_1 : f32 to vector<2x1024xf32>
    %6 = arith.cmpf oge, %0, %5 : vector<2x1024xf32>
    %7 = arith.mulf %4, %4 : vector<2x1024xf32>
    %cst_2 = arith.constant 1.000000e+00 : f32
    %8 = vector.broadcast %cst_2 : f32 to vector<2x1024xf32>
    %9 = arith.select %6, %7, %8 : vector<2x1024xi1>, vector<2x1024xf32>
    %cst_3 = arith.constant 1.000000e+00 : f32
    %10 = vector.broadcast %cst_3 : f32 to vector<2x1024xf32>
    %11 = arith.addf %10, %4 : vector<2x1024xf32>
    %cst_4 = arith.constant 1.000000e+00 : f32
    %12 = vector.broadcast %cst_4 : f32 to vector<2x1024xf32>
    %13 = arith.addf %12, %4 : vector<2x1024xf32>
    %14 = arith.mulf %11, %13 : vector<2x1024xf32>
    %15 = arith.addf %14, %9 : vector<2x1024xf32>
    %cst_5 = arith.constant 2.000000e+00 : f32
    %16 = vector.broadcast %cst_5 : f32 to vector<2x1024xf32>
    %17 = arith.mulf %16, %9 : vector<2x1024xf32>
    %18 = tpu.reciprocal %15 : vector<2x1024xf32> -> vector<2x1024xf32>
    %19 = arith.mulf %17, %18 : vector<2x1024xf32>
    %cst_6 = arith.constant 1.000000e+00 : f32
    %20 = vector.broadcast %cst_6 : f32 to vector<2x1024xf32>
    %21 = arith.subf %20, %19 : vector<2x1024xf32>
    %22 = arith.mulf %0, %21 : vector<2x1024xf32>
    %c0_7 = arith.constant 0 : index
    %c0_8 = arith.constant 0 : index
    %23 = vector.load %arg1[%c0_7, %c0_8] : memref<2x1024xf32, #tpu.memory_space<vmem>>, vector<2x1024xf32>
    tpu.vector_store %arg1[%c0_7, %c0_8], %22 {strides = array<i32>} : memref<2x1024xf32, #tpu.memory_space<vmem>>, vector<2x1024xf32>,
    return
  }
}

</mosaic_0001>

<bundles_post_ra>
// kernel: mish.1
= control target key start
LH: loop header
LB: loop body
LE: loop exit
PB: predicated region body
PF: predicated region fallthrough
CT: control target
= control target key end

     0   :  { %s102_s0 = inlined_call_operand.vmem [shape: f32[2,1024], index: 0, kind: input, shape index: {}]   ;;  %s103_s1 = inlined_call_operand.vmem [shape: f32[2,1024], index: 1, kind: output, shape index: {}]  }
   0x1   :  { %v8_v0 = vld [vmem:[%s102_s0] sm:$0xff]  ;;  %v9_v1 = vld [vmem:[%s102_s0 + $0x8] sm:$0xff] }
   0x2   :  { %v10_v2 = vand.u32 2147483647, %v8_v0  ;;  %v11_v3 = vand.u32 2147483647, %v9_v1  ;;  %vm18_vm0 = vcmp.ge.f32.partialorder %v8_v0, 0.0  ;;  %vm19_vm1 = vcmp.ge.f32.partialorder %v9_v1, 0.0 }
   0x4   :  { %v12_v4 = vsub.f32 0.0, %v10_v2  ;;  %v13_v5 = vsub.f32 0.0, %v11_v3 }
   0x6   :  { %v14_v6 = vmul.f32 1.442695, %v12_v4  ;;  %v16_v7 = vmul.f32 1.442695, %v13_v5 }
   0x8   :  { %72 = vpow2.f32 %v14_v6 }
   0x9   :  { %74 = vpow2.f32 %v16_v7 }
   0xe   :  { %v73_v8 = vpop.eup %72 }
   0xf   :  { %v75_v9 = vpop.eup %74  ;;  %v20_v10 = vmul.f32 %v73_v8, %v73_v8  ;;  %v24_v11 = vadd.f32 1.0, %v73_v8 }
  0x10   :  { %v21_v12 = vmul.f32 %v75_v9, %v75_v9  ;;  %v25_v13 = vadd.f32 1.0, %v75_v9 }
  0x11   :  { %v22_v14 = vsel %vm18_vm0, %v20_v10, 1.0  ;;  %v26_v15 = vmul.f32 %v24_v11, %v24_v11 }
  0x12   :  { %v23_v16 = vsel %vm19_vm1, %v21_v12, 1.0  ;;  %v27_v17 = vmul.f32 %v25_v13, %v25_v13  ;;  %v30_v33 = vmul.f32 2.0, %v22_v14 }
  0x13   :  { %v28_v18 = vadd.f32 %v26_v15, %v22_v14  ;;  %v31_v36 = vmul.f32 2.0, %v23_v16 }
  0x14   :  { %v29_v19 = vadd.f32 %v27_v17, %v23_v16 }
  0x15   :  { %76 = vrcp.f32 %v28_v18  ;;  %vm37_vm2 = vweird.f32 %v28_v18  ;;  %v43_v23 = vand.u32 2147483648, %v28_v18  ;;  %v41_v26 = vand.u32 2147483647, %v28_v18 }
  0x16   :  { %78 = vrcp.f32 %v29_v19  ;;  %v57_v27 = vand.u32 2147483648, %v29_v19  ;;  %vm51_vm4 = vweird.f32 %v29_v19  ;;  %v55_v29 = vand.u32 2147483647, %v29_v19 }
  0x17   :  { %v44_v31 = vor.u32 1.1754944e-38, %v43_v23  ;;  %vm42_vm7 = vcmp.eq.f32.partialorder %v41_v26, 8.507059e+37 }
  0x18   :  { %v58_v35 = vor.u32 1.1754944e-38, %v57_v27  ;;  %vm56_vm9 = vcmp.eq.f32.partialorder %v55_v29, 8.507059e+37 }
  0x1b   :  { %v77_v20 = vpop.eup %76 }
  0x1c   :  { %v79_v21 = vpop.eup %78  ;;  %v33_v22 = vmul.f32 %v77_v20, %v28_v18  ;;  %vm38_vm3 = vweird.f32 %v77_v20 }
  0x1d   :  { %v47_v24 = vmul.f32 %v79_v21, %v29_v19  ;;  %vm52_vm5 = vweird.f32 %v79_v21  ;;  %vm39_vm6 = vmor %vm37_vm2, %vm38_vm3 }
  0x1e   :  { %v34_v25 = vsub.f32 1.0, %v33_v22  ;;  %vm53_vm8 = vmor %vm51_vm4, %vm52_vm5 }
  0x1f   :  { %v48_v28 = vsub.f32 1.0, %v47_v24 }
  0x20   :  { %v35_v30 = vmul.f32 %v77_v20, %v34_v25 }
  0x21   :  { %v49_v32 = vmul.f32 %v79_v21, %v48_v28 }
  0x22   :  { %v36_v34 = vadd.f32 %v77_v20, %v35_v30 }
  0x23   :  { %v50_v37 = vadd.f32 %v79_v21, %v49_v32 }
  0x24   :  { %v40_v38 = vsel %vm39_vm6, %v77_v20, %v36_v34 }
  0x25   :  { %v45_v39 = vsel %vm42_vm7, %v44_v31, %v40_v38  ;;  %v54_v40 = vsel %vm53_vm8, %v79_v21, %v50_v37 }
  0x26   :  { %v60_v41 = vmul.f32 %v45_v39, %v30_v33  ;;  %v59_v42 = vsel %vm56_vm9, %v58_v35, %v54_v40 }
  0x27   :  { %v61_v43 = vmul.f32 %v59_v42, %v31_v36 }
  0x28   :  { %v62_v44 = vsub.f32 1.0, %v60_v41 }
  0x29   :  { %v63_v45 = vsub.f32 1.0, %v61_v43 }
  0x2a   :  { %v64_v46 = vmul.f32 %v62_v44, %v8_v0 }
  0x2b   :  { %v65_v47 = vmul.f32 %v63_v45, %v9_v1 }
  0x2c   :  { %66 = vst [vmem:[%s103_s1] sm:$0xff] %v64_v46 }
  0x2d   :  { %67 = vst [vmem:[%s103_s1 + $0x8] sm:$0xff] %v65_v47 }

</bundles_post_ra>
